<compile_context>
chip_gen: v5e
topology: v5e:2x2
jax: 0.10.0
libtpu: 0.0.40
codegen_flags: <defaults>
</compile_context>

<pallas_src>
import jax
import jax.numpy as jnp
from jax import lax
from jax.experimental import pallas as pl
from jax.experimental.pallas import tpu as pltpu

INPUT_DIM = 28
HIDDEN_DIM = 100
LAYER_DIM = 1      # module hardcodes a single RNN layer
OUTPUT_DIM = 10


def _round_up(n, m):
    return ((n + m - 1) // m) * m


def rnn_kernel(x_ref, wih_ref, whh_ref, bias_ref, wfc_ref, bfc_ref, out_ref, proj_ref):
    """Single invocation: whole sequence VMEM-resident, scratch-backed projection.

    x_ref:    (T*Bp, D)         time-major, batch-padded, pre-flattened in wrapper
    wih_ref:  (D, Hp)           W_ih^T, zero-padded to lane-dense Hp
    whh_ref:  (Hp, Hp)          W_hh^T, zero-padded
    bias_ref: (1, Hp)  f32      b_ih + b_hh (folded), zero-padded
    wfc_ref:  (Hp, Op)          W_fc^T, zero-padded
    bfc_ref:  (1, Op)  f32      b_fc, zero-padded
    out_ref:  (Bp, Op) f32      FC output (lane-dense, unmasked stores)
    proj_ref: (T*Bp, Hp) f32    VMEM scratch holding the hoisted input projection
    """
    TB, _ = x_ref.shape
    Bp = out_ref.shape[0]
    Hp = whh_ref.shape[1]
    T = TB // Bp
    cdt = whh_ref.dtype                               # MXU input dtype (f32 or bf16)

    # Hoisted input projection (no recurrence dependency): one big MXU matmul over
    # all T*Bp rows, written straight to VMEM scratch so it is not live in vregs
    # across the unrolled recurrence.
    # NOTE: padded batch rows of x are zero, so their projection is just the bias;
    # they pick up relu(bias) through the recurrence but are sliced away in the
    # wrapper — do not reuse padded rows of h/out without the [:B] slice.
    proj_ref[...] = (jnp.dot(x_ref[...], wih_ref[...],
                             preferred_element_type=jnp.float32)
                     + bias_ref[...])

    whh = whh_ref[...]                                # loop-invariant RHS
    h0 = jnp.zeros((Bp, Hp), jnp.float32)             # h_0 = 0, f32 accumulator

    def step(t, h):
        row = pl.multiple_of(t * Bp, Bp)              # aligned, sublane-group start
        p_t = proj_ref[pl.ds(row, Bp), :]             # per-step slice from scratch
        pre = p_t + jnp.dot(h.astype(cdt), whh, preferred_element_type=jnp.float32)
        return jnp.maximum(pre, 0.0)                  # nonlinearity='relu'

    # Serial recurrence over time only; modest block unroll keeps scheduler
    # visibility while bounding vreg pressure for larger T.
    h = lax.fori_loop(0, T, step, h0, unroll=min(T, 8))

    # Final FC on the last hidden state; Op is lane-dense (128) -> unmasked stores.
    out_ref[...] = (jnp.dot(h.astype(cdt), wfc_ref[...],
                            preferred_element_type=jnp.float32)
                    + bfc_ref[...])


def prepare_params(params, *, compute_dtype=jnp.float32):
    """One-time weight-side precompute (cache the result; NOT on the per-call path).

    Transposes weights to (in, out), folds b_ih + b_hh into a single bias, and
    zero-pads everything to lane-dense shapes (H 100->128, FC out 10->128).
    compute_dtype is the dtype fed to the MXU (float32 default — recommended on
    v5e; bf16 is the fast path on v6e/v7x).  Biases stay float32.
    """
    D, H, O = INPUT_DIM, HIDDEN_DIM, OUTPUT_DIM
    Hp = _round_up(H, 128)
    Op = _round_up(O, 128)
    cdt = compute_dtype
    return {
        "wih": jnp.zeros((D, Hp), cdt).at[:, :H].set(params["w_ih"].T.astype(cdt)),
        "whh": jnp.zeros((Hp, Hp), cdt).at[:H, :H].set(params["w_hh"].T.astype(cdt)),
        "bias": jnp.zeros((1, Hp), jnp.float32).at[:, :H].set(
            (params["b_ih"] + params["b_hh"]).reshape(1, H).astype(jnp.float32)),
        "wfc": jnp.zeros((Hp, Op), cdt).at[:H, :O].set(params["w_fc"].T.astype(cdt)),
        "bfc": jnp.zeros((1, Op), jnp.float32).at[:, :O].set(
            params["b_fc"].reshape(1, O).astype(jnp.float32)),
    }


def rnn_model_forward(x_btd, prepped):
    """Forward pass of RNNModel.  x_btd: (B, T, D) batch_first, like PyTorch.

    `prepped` is the cached output of prepare_params() — padded weights are NOT
    rebuilt per call.  Accumulation, biases and relu are always float32.
    """
    B, T, D = x_btd.shape
    assert D == INPUT_DIM
    O = OUTPUT_DIM
    Hp = prepped["whh"].shape[0]
    Op = prepped["wfc"].shape[1]
    Bp = _round_up(max(B, 8), 8)      # f32 sublane multiple
    cdt = prepped["whh"].dtype

    # Time-major relayout + batch-pad + flatten fused into one wrapper-side copy
    # (the kernel does no einshape/reshape).  Padded batch rows are zero.
    x_flat = (jnp.zeros((T, Bp, D), cdt)
              .at[:, :B, :].set(jnp.transpose(x_btd, (1, 0, 2)).astype(cdt))
              .reshape(T * Bp, D))

    flops = 2 * T * Bp * D * Hp + 2 * T * Bp * Hp * Hp + 2 * Bp * Hp * Op
    bytes_accessed = (x_flat.size * x_flat.dtype.itemsize
                      + sum(int(v.size) * v.dtype.itemsize for v in prepped.values())
                      + Bp * Op * 4)

    vmem = pl.BlockSpec(memory_space=pltpu.MemorySpace.VMEM)
    out = pl.pallas_call(
        rnn_kernel,
        out_shape=jax.ShapeDtypeStruct((Bp, Op), jnp.float32),
        in_specs=[vmem] * 6,
        out_specs=vmem,
        scratch_shapes=[pltpu.VMEM((T * Bp, Hp), jnp.float32)],
        cost_estimate=pl.CostEstimate(flops=flops, transcendentals=0,
                                      bytes_accessed=bytes_accessed),
        # No grid: single invocation, everything VMEM-resident (< 1 MiB).  For
        # large B/T (esp. on v7x's 64 MiB VMEM), switch to a gridded layout with a
        # core-parallel batch axis and time-streamed x blocks.
    )(x_flat, prepped["wih"], prepped["whh"], prepped["bias"],
      prepped["wfc"], prepped["bfc"])
    return out[:B, :O]


def init_params(key):
    """Deterministic init mimicking PyTorch's U(-1/sqrt(H), 1/sqrt(H))."""
    ks = jax.random.split(key, 6)
    bound = 1.0 / jnp.sqrt(jnp.float32(HIDDEN_DIM))
    u = lambda k, shape: jax.random.uniform(k, shape, jnp.float32, -bound, bound)
    return {
        "w_ih": u(ks[0], (HIDDEN_DIM, INPUT_DIM)),
        "w_hh": u(ks[1], (HIDDEN_DIM, HIDDEN_DIM)),
        "b_ih": u(ks[2], (HIDDEN_DIM,)),
        "b_hh": u(ks[3], (HIDDEN_DIM,)),
        "w_fc": u(ks[4], (OUTPUT_DIM, HIDDEN_DIM)),
        "b_fc": u(ks[5], (OUTPUT_DIM,)),
    }


def reference_forward(x_btd, p):
    """Pure-JAX reference (mirrors torch.nn.RNN + Linear semantics)."""
    B = x_btd.shape[0]
    h0 = jnp.zeros((B, HIDDEN_DIM), jnp.float32)

    def step(h, xt):
        h_new = jax.nn.relu(xt @ p["w_ih"].T + p["b_ih"] + h @ p["w_hh"].T + p["b_hh"])
        return h_new, None

    hT, _ = lax.scan(step, h0, jnp.transpose(x_btd, (1, 0, 2)))
    return hT @ p["w_fc"].T + p["b_fc"]


if __name__ == "__main__":
    key = jax.random.PRNGKey(0)
    kx, kp = jax.random.split(key)

    B, T = 2, 8                                     # small batch / sequence
    x = jax.random.normal(kx, (B, T, INPUT_DIM), jnp.float32)
    params = init_params(kp)

    ref = reference_forward(x, params)
    forward = jax.jit(rnn_model_forward)            # jit so wrapper-side pad/copy fuses

    # f32 path (bit-accurate check vs. the pure-JAX reference) — default / v5e path.
    prepped_f32 = prepare_params(params)            # one-time cached weight prep
    out = jax.block_until_ready(forward(x, prepped_f32))
    assert out.shape == (B, OUTPUT_DIM)
    assert jnp.allclose(out, ref, atol=1e-3, rtol=1e-3), "f32 kernel mismatch vs reference"

    # bf16 MXU path (f32 accumulation) — the fast path on v6e/v7x.
    prepped_bf16 = prepare_params(params, compute_dtype=jnp.bfloat16)
    out_bf16 = jax.block_until_ready(forward(x, prepped_bf16))
    assert out_bf16.shape == (B, OUTPUT_DIM)
    assert jnp.allclose(out_bf16, ref, atol=1e-1, rtol=1e-1), "bf16 kernel mismatch vs reference"

    print("KERNEL_OK")
</pallas_src>

<mosaic_0001>
module attributes {stable_mosaic.version = 11 : i64} {
  func.func @rnn_kernel(%arg0: memref<64x28xf32, #tpu.memory_space<vmem>>, %arg1: memref<28x128xf32, #tpu.memory_space<vmem>>, %arg2: memref<128x128xf32, #tpu.memory_space<vmem>>, %arg3: memref<1x128xf32, #tpu.memory_space<vmem>>, %arg4: memref<128x128xf32, #tpu.memory_space<vmem>>, %arg5: memref<1x128xf32, #tpu.memory_space<vmem>>, %arg6: memref<8x128xf32, #tpu.memory_space<vmem>>, %arg7: memref<64x128xf32, #tpu.memory_space<vmem>>) attributes {dimension_semantics = [], scalar_prefetch = 0 : i64, scratch_operands = 1 : i64, tpu.core_type = #tpu.core_type<tc>} {
    %c0 = arith.constant 0 : index
    %c0_0 = arith.constant 0 : index
    %0 = vector.load %arg0[%c0, %c0_0] : memref<64x28xf32, #tpu.memory_space<vmem>>, vector<64x28xf32>
    %c0_1 = arith.constant 0 : index
    %c0_2 = arith.constant 0 : index
    %1 = vector.load %arg1[%c0_1, %c0_2] : memref<28x128xf32, #tpu.memory_space<vmem>>, vector<28x128xf32>
    %cst = arith.constant dense<0.000000e+00> : vector<64x128xf32>
    %2 = tpu.matmul %0, %1, %cst {dimension_numbers = #tpu.dot_dimension_numbers<[1], [0], [0], [1], [0, 0, 1, 1], [], []>} : vector<64x28xf32>, vector<28x128xf32>, vector<64x128xf32> -> vector<64x128xf32>
    %c0_3 = arith.constant 0 : index
    %c0_4 = arith.constant 0 : index
    %3 = vector.load %arg3[%c0_3, %c0_4] : memref<1x128xf32, #tpu.memory_space<vmem>>, vector<1x128xf32>
    %4 = vector.broadcast %3 : vector<1x128xf32> to vector<64x128xf32>
    %5 = arith.addf %2, %4 : vector<64x128xf32>
    %c0_5 = arith.constant 0 : index
    %c0_6 = arith.constant 0 : index
    %6 = vector.load %arg7[%c0_5, %c0_6] : memref<64x128xf32, #tpu.memory_space<vmem>>, vector<64x128xf32>
    tpu.vector_store %arg7[%c0_5, %c0_6], %5 {strides = array<i32>} : memref<64x128xf32, #tpu.memory_space<vmem>>, vector<64x128xf32>,
    %c0_7 = arith.constant 0 : index
    %c0_8 = arith.constant 0 : index
    %7 = vector.load %arg2[%c0_7, %c0_8] : memref<128x128xf32, #tpu.memory_space<vmem>>, vector<128x128xf32>
    %cst_9 = arith.constant 0.000000e+00 : f32
    %8 = vector.broadcast %cst_9 : f32 to vector<8x128xf32>
    %c0_i32 = arith.constant 0 : i32
    %c8_i32 = arith.constant 8 : i32
    %9 = arith.muli %c0_i32, %c8_i32 : i32
    %10 = tpu.assume_multiple %9, 8 : i32
    %11 = arith.index_cast %10 : i32 to index
    %c0_10 = arith.constant 0 : index
    %12 = vector.load %arg7[%11, %c0_10] : memref<64x128xf32, #tpu.memory_space<vmem>>, vector<8x128xf32>
    %cst_11 = arith.constant dense<0.000000e+00> : vector<8x128xf32>
    %13 = tpu.matmul %8, %7, %cst_11 {dimension_numbers = #tpu.dot_dimension_numbers<[1], [0], [0], [1], [0, 0, 1, 1], [], []>} : vector<8x128xf32>, vector<128x128xf32>, vector<8x128xf32> -> vector<8x128xf32>
    %14 = arith.addf %12, %13 : vector<8x128xf32>
    %cst_12 = arith.constant 0.000000e+00 : f32
    %15 = vector.broadcast %cst_12 : f32 to vector<8x128xf32>
    %16 = arith.maximumf %14, %15 : vector<8x128xf32>
    %c1_i32 = arith.constant 1 : i32
    %c8_i32_13 = arith.constant 8 : i32
    %17 = arith.muli %c1_i32, %c8_i32_13 : i32
    %18 = tpu.assume_multiple %17, 8 : i32
    %19 = arith.index_cast %18 : i32 to index
    %c0_14 = arith.constant 0 : index
    %20 = vector.load %arg7[%19, %c0_14] : memref<64x128xf32, #tpu.memory_space<vmem>>, vector<8x128xf32>
    %cst_15 = arith.constant dense<0.000000e+00> : vector<8x128xf32>
    %21 = tpu.matmul %16, %7, %cst_15 {dimension_numbers = #tpu.dot_dimension_numbers<[1], [0], [0], [1], [0, 0, 1, 1], [], []>} : vector<8x128xf32>, vector<128x128xf32>, vector<8x128xf32> -> vector<8x128xf32>
    %22 = arith.addf %20, %21 : vector<8x128xf32>
    %cst_16 = arith.constant 0.000000e+00 : f32
    %23 = vector.broadcast %cst_16 : f32 to vector<8x128xf32>
    %24 = arith.maximumf %22, %23 : vector<8x128xf32>
    %c2_i32 = arith.constant 2 : i32
    %c8_i32_17 = arith.constant 8 : i32
    %25 = arith.muli %c2_i32, %c8_i32_17 : i32
    %26 = tpu.assume_multiple %25, 8 : i32
    %27 = arith.index_cast %26 : i32 to index
    %c0_18 = arith.constant 0 : index
    %28 = vector.load %arg7[%27, %c0_18] : memref<64x128xf32, #tpu.memory_space<vmem>>, vector<8x128xf32>
    %cst_19 = arith.constant dense<0.000000e+00> : vector<8x128xf32>
    %29 = tpu.matmul %24, %7, %cst_19 {dimension_numbers = #tpu.dot_dimension_numbers<[1], [0], [0], [1], [0, 0, 1, 1], [], []>} : vector<8x128xf32>, vector<128x128xf32>, vector<8x128xf32> -> vector<8x128xf32>
    %30 = arith.addf %28, %29 : vector<8x128xf32>
    %cst_20 = arith.constant 0.000000e+00 : f32
    %31 = vector.broadcast %cst_20 : f32 to vector<8x128xf32>
    %32 = arith.maximumf %30, %31 : vector<8x128xf32>
    %c3_i32 = arith.constant 3 : i32
    %c8_i32_21 = arith.constant 8 : i32
    %33 = arith.muli %c3_i32, %c8_i32_21 : i32
    %34 = tpu.assume_multiple %33, 8 : i32
    %35 = arith.index_cast %34 : i32 to index
    %c0_22 = arith.constant 0 : index
    %36 = vector.load %arg7[%35, %c0_22] : memref<64x128xf32, #tpu.memory_space<vmem>>, vector<8x128xf32>
    %cst_23 = arith.constant dense<0.000000e+00> : vector<8x128xf32>
    %37 = tpu.matmul %32, %7, %cst_23 {dimension_numbers = #tpu.dot_dimension_numbers<[1], [0], [0], [1], [0, 0, 1, 1], [], []>} : vector<8x128xf32>, vector<128x128xf32>, vector<8x128xf32> -> vector<8x128xf32>
    %38 = arith.addf %36, %37 : vector<8x128xf32>
    %cst_24 = arith.constant 0.000000e+00 : f32
    %39 = vector.broadcast %cst_24 : f32 to vector<8x128xf32>
    %40 = arith.maximumf %38, %39 : vector<8x128xf32>
    %c4_i32 = arith.constant 4 : i32
    %c8_i32_25 = arith.constant 8 : i32
    %41 = arith.muli %c4_i32, %c8_i32_25 : i32
    %42 = tpu.assume_multiple %41, 8 : i32
    %43 = arith.index_cast %42 : i32 to index
    %c0_26 = arith.constant 0 : index
    %44 = vector.load %arg7[%43, %c0_26] : memref<64x128xf32, #tpu.memory_space<vmem>>, vector<8x128xf32>
    %cst_27 = arith.constant dense<0.000000e+00> : vector<8x128xf32>
    %45 = tpu.matmul %40, %7, %cst_27 {dimension_numbers = #tpu.dot_dimension_numbers<[1], [0], [0], [1], [0, 0, 1, 1], [], []>} : vector<8x128xf32>, vector<128x128xf32>, vector<8x128xf32> -> vector<8x128xf32>
    %46 = arith.addf %44, %45 : vector<8x128xf32>
    %cst_28 = arith.constant 0.000000e+00 : f32
    %47 = vector.broadcast %cst_28 : f32 to vector<8x128xf32>
    %48 = arith.maximumf %46, %47 : vector<8x128xf32>
    %c5_i32 = arith.constant 5 : i32
    %c8_i32_29 = arith.constant 8 : i32
    %49 = arith.muli %c5_i32, %c8_i32_29 : i32
    %50 = tpu.assume_multiple %49, 8 : i32
    %51 = arith.index_cast %50 : i32 to index
    %c0_30 = arith.constant 0 : index
    %52 = vector.load %arg7[%51, %c0_30] : memref<64x128xf32, #tpu.memory_space<vmem>>, vector<8x128xf32>
    %cst_31 = arith.constant dense<0.000000e+00> : vector<8x128xf32>
    %53 = tpu.matmul %48, %7, %cst_31 {dimension_numbers = #tpu.dot_dimension_numbers<[1], [0], [0], [1], [0, 0, 1, 1], [], []>} : vector<8x128xf32>, vector<128x128xf32>, vector<8x128xf32> -> vector<8x128xf32>
    %54 = arith.addf %52, %53 : vector<8x128xf32>
    %cst_32 = arith.constant 0.000000e+00 : f32
    %55 = vector.broadcast %cst_32 : f32 to vector<8x128xf32>
    %56 = arith.maximumf %54, %55 : vector<8x128xf32>
    %c6_i32 = arith.constant 6 : i32
    %c8_i32_33 = arith.constant 8 : i32
    %57 = arith.muli %c6_i32, %c8_i32_33 : i32
    %58 = tpu.assume_multiple %57, 8 : i32
    %59 = arith.index_cast %58 : i32 to index
    %c0_34 = arith.constant 0 : index
    %60 = vector.load %arg7[%59, %c0_34] : memref<64x128xf32, #tpu.memory_space<vmem>>, vector<8x128xf32>
    %cst_35 = arith.constant dense<0.000000e+00> : vector<8x128xf32>
    %61 = tpu.matmul %56, %7, %cst_35 {dimension_numbers = #tpu.dot_dimension_numbers<[1], [0], [0], [1], [0, 0, 1, 1], [], []>} : vector<8x128xf32>, vector<128x128xf32>, vector<8x128xf32> -> vector<8x128xf32>
    %62 = arith.addf %60, %61 : vector<8x128xf32>
    %cst_36 = arith.constant 0.000000e+00 : f32
    %63 = vector.broadcast %cst_36 : f32 to vector<8x128xf32>
    %64 = arith.maximumf %62, %63 : vector<8x128xf32>
    %c7_i32 = arith.constant 7 : i32
    %c8_i32_37 = arith.constant 8 : i32
    %65 = arith.muli %c7_i32, %c8_i32_37 : i32
    %66 = tpu.assume_multiple %65, 8 : i32
    %67 = arith.index_cast %66 : i32 to index
    %c0_38 = arith.constant 0 : index
    %68 = vector.load %arg7[%67, %c0_38] : memref<64x128xf32, #tpu.memory_space<vmem>>, vector<8x128xf32>
    %cst_39 = arith.constant dense<0.000000e+00> : vector<8x128xf32>
    %69 = tpu.matmul %64, %7, %cst_39 {dimension_numbers = #tpu.dot_dimension_numbers<[1], [0], [0], [1], [0, 0, 1, 1], [], []>} : vector<8x128xf32>, vector<128x128xf32>, vector<8x128xf32> -> vector<8x128xf32>
    %70 = arith.addf %68, %69 : vector<8x128xf32>
    %cst_40 = arith.constant 0.000000e+00 : f32
    %71 = vector.broadcast %cst_40 : f32 to vector<8x128xf32>
    %72 = arith.maximumf %70, %71 : vector<8x128xf32>
    %c8_i32_41 = arith.constant 8 : i32
    %c0_42 = arith.constant 0 : index
    %c0_43 = arith.constant 0 : index
    %73 = vector.load %arg4[%c0_42, %c0_43] : memref<128x128xf32, #tpu.memory_space<vmem>>, vector<128x128xf32>
    %cst_44 = arith.constant dense<0.000000e+00> : vector<8x128xf32>
    %74 = tpu.matmul %72, %73, %cst_44 {dimension_numbers = #tpu.dot_dimension_numbers<[1], [0], [0], [1], [0, 0, 1, 1], [], []>} : vector<8x128xf32>, vector<128x128xf32>, vector<8x128xf32> -> vector<8x128xf32>
    %c0_45 = arith.constant 0 : index
    %c0_46 = arith.constant 0 : index
    %75 = vector.load %arg5[%c0_45, %c0_46] : memref<1x128xf32, #tpu.memory_space<vmem>>, vector<1x128xf32>
    %76 = vector.broadcast %75 : vector<1x128xf32> to vector<8x128xf32>
    %77 = arith.addf %74, %76 : vector<8x128xf32>
    %c0_47 = arith.constant 0 : index
    %c0_48 = arith.constant 0 : index
    %78 = vector.load %arg6[%c0_47, %c0_48] : memref<8x128xf32, #tpu.memory_space<vmem>>, vector<8x128xf32>
    tpu.vector_store %arg6[%c0_47, %c0_48], %77 {strides = array<i32>} : memref<8x128xf32, #tpu.memory_space<vmem>>, vector<8x128xf32>,
    return
  }
}

</mosaic_0001>

<bundles_post_ra>
// kernel: rnn_model_forward.1
= control target key start
LH: loop header
LB: loop body
LE: loop exit
PB: predicated region body
PF: predicated region fallthrough
CT: control target
= control target key end

     0   :  { %11 = vsyncpa [#allocation4], 0  ;;  %s740_s0 = inlined_call_operand.vmem [shape: f32[64,28], index: 0, kind: input, shape index: {}]   ;;  %s741_s1 = inlined_call_operand.vmem [shape: f32[28,128], index: 1, kind: input, shape index: {}]   ;;  %s742_s2 = inlined_call_operand.hbm [shape: f32[128,128], index: 2, kind: input, shape index: {}]   ;;  %s743_s3 = inlined_call_operand.vmem [shape: f32[1,128], index: 3, kind: input, shape index: {}]   ;;  %s744_s4 = inlined_call_operand.hbm [shape: f32[128,128], index: 4, kind: input, shape index: {}]   ;;  %s745_s5 = inlined_call_operand.vmem [shape: f32[1,128], index: 5, kind: input, shape index: {}]   ;;  %s746_s6 = inlined_call_operand.vmem [shape: f32[8,128], index: 6, kind: output, shape index: {}]  }
   0x1   :  { %s21_s23 = sshll.u32 %s742_s2, 4  ;;  %s22_s23 = int_to_ptr.hbm [resolvable:$true] %s21_s23 }
   0x2   :  { %12 = vsyncpa [#allocation6], 0  ;;  %s471_s24 = smov [#allocation3]   ;;  %s36_s28 = sshll.u32 %s744_s4, 4  ;;  %s37_s28 = int_to_ptr.hbm [resolvable:$true] %s36_s28 }
   0x3   :  { %s23_s25 = sshll.u32 %s471_s24, 4  ;;  %s472_s29 = smov 128   ;;  %s24_s25 = int_to_ptr.vmem [resolvable:$true] %s23_s25 }
   0x4   :  { %s473_s30 = smov 8   ;;  %s474_s7 = smov [#allocation5]  }
   0x5   :  { %29 = dma.hbm_to_vmem [thread:$0]  %s22_s23, 2048, %s24_s25, [#allocation4], %s472_s29, %s472_s29, %s473_s30  }
   0x6   :  { %s38_s8 = sshll.u32 %s474_s7, 4  ;;  %s39_s8 = int_to_ptr.vmem [resolvable:$true] %s38_s8 }
   0x7   :  { %44 = dma.hbm_to_vmem [thread:$0]  %s37_s28, 2048, %s39_s8, [#allocation6], %s472_s29, %s472_s29, %s473_s30  }
   0x8   :  { %467 = dma.done.wait [#allocation4], 2048  }
   0x9   :  { %468 = vsyncadd [#allocation4], 4294965248 }
   0xa   :  { %469 = dma.done.wait [#allocation6], 2048  }
   0xb   :  { %470 = vsyncadd [#allocation6], 4294965248  ;;  %v517_v0 = vld [vmem:[#allocation3 + $0x78] sm:$0xff]  ;;  %v519_v1 = vld [vmem:[#allocation3 + $0x70] sm:$0xff]  ;;  %vm96_vm0 = vcmask 1043456   ;;  %vm71_vm1 = vcmask 228352  }
   0xc   :  { %166 = vmatpush.msra.mxu1 %v517_v0  ;;  %190 = vmatpush.msra.mxu2 %v517_v0  ;;  %v523_v2 = vld [vmem:[#allocation3 + $0x68] sm:$0xff]  ;;  %v66_v3 = vld [vmem:[%s741_s1 + $0x18] sm:$0xf]  ;;  %v531_v4 = vld [vmem:[#allocation3 + $0x60] sm:$0xff]  ;;  %v475_v21 = vmov 0.0  }
   0xd   :  { %214 = vmatpush.msra.mxu3 %v517_v0  ;;  %403 = vmatpush.msk.msra.mxu0 %vm96_vm0, %v66_v3  ;;  %v65_v5 = vld [vmem:[%s741_s1 + $0x10] sm:$0xff]  ;;  %v64_v6 = vld [vmem:[%s741_s1 + $0x8] sm:$0xff]  ;;  %v542_v7 = vld [vmem:[#allocation3 + $0x58] sm:$0xff] }
   0xe   :  { %167 = vmatpush.msra.mxu1 %v519_v1  ;;  %191 = vmatpush.msra.mxu2 %v519_v1  ;;  %v63_v8 = vld [vmem:[%s741_s1] sm:$0xff]  ;;  %v550_v9 = vld [vmem:[#allocation3 + $0x50] sm:$0xff]  ;;  %v558_v11 = vld [vmem:[#allocation3 + $0x48] sm:$0xff] }
   0xf   :  { %215 = vmatpush.msra.mxu3 %v519_v1  ;;  %113 = vmatpush.msra.mxu0 %v65_v5  ;;  %v55_v10 = vld [vmem:[%s740_s0] sm:$0xff]  ;;  %v569_v13 = vld [vmem:[#allocation3 + $0x38] sm:$0xff]  ;;  %v575_v14 = vld [vmem:[#allocation3 + $0x30] sm:$0xff] }
  0x10   :  { %168 = vmatpush.msra.mxu1 %v523_v2  ;;  %192 = vmatpush.msra.mxu2 %v523_v2  ;;  %v563_v12 = vld [vmem:[#allocation3 + $0x40] sm:$0xff]  ;;  %v581_v15 = vld [vmem:[#allocation3 + $0x28] sm:$0xff]  ;;  %v593_v17 = vld [vmem:[#allocation3 + $0x18] sm:$0xff] }
  0x11   :  { %216 = vmatpush.msra.mxu3 %v523_v2  ;;  %114 = vmatpush.msra.mxu0 %v64_v6  ;;  %v587_v16 = vld [vmem:[#allocation3 + $0x20] sm:$0xff]  ;;  %v599_v18 = vld [vmem:[#allocation3 + $0x10] sm:$0xff]  ;;  %v605_v19 = vld [vmem:[#allocation3 + $0x8] sm:$0xff] }
  0x12   :  { %169 = vmatpush.msra.mxu1 %v531_v4  ;;  %193 = vmatpush.msra.mxu2 %v531_v4  ;;  %v611_v20 = vld [vmem:[#allocation3] sm:$0xff]  ;;  %v56_v22 = vld [vmem:[%s740_s0 + $0x8] sm:$0xff]  ;;  %v57_v29 = vld [vmem:[%s740_s0 + $0x10] sm:$0xff] }
  0x13   :  { %217 = vmatpush.msra.mxu3 %v531_v4  ;;  %115 = vmatpush.msra.mxu0 %v63_v8  ;;  %v700_v23 = vld [vmem:[%s743_s3] ss:$0 sm:$0xff]  ;;  %v58_v35 = vld [vmem:[%s740_s0 + $0x18] sm:$0xff]  ;;  %v60_v47 = vld [vmem:[%s740_s0 + $0x28] sm:$0xff] }
  0x14   :  { %170 = vmatpush.msra.mxu1 %v542_v7  ;;  %194 = vmatpush.msra.mxu2 %v542_v7  ;;  %v59_v41 = vld [vmem:[%s740_s0 + $0x20] sm:$0xff]  ;;  %v61_v48 = vld [vmem:[%s740_s0 + $0x30] sm:$0xff]  ;;  %v62_v49 = vld [vmem:[%s740_s0 + $0x38] sm:$0xff] }
  0x15   :  { %218 = vmatpush.msra.mxu3 %v542_v7  ;;  %404 = vmatmul.msk.f32.vlgmr.msra.gmra.mxu0 %vm71_vm1, %v55_v10  ;;  %v371_v60 = vld [vmem:[#allocation5 + $0x78] sm:$0xff]  ;;  %v370_v61 = vld [vmem:[#allocation5 + $0x70] sm:$0xff]  ;;  %v369_v62 = vld [vmem:[#allocation5 + $0x68] sm:$0xff] }
  0x16   :  { %171 = vmatpush.msra.mxu1 %v550_v9  ;;  %195 = vmatpush.msra.mxu2 %v550_v9  ;;  %v368_v63 = vld [vmem:[#allocation5 + $0x60] sm:$0xff]  ;;  %v365_v3 = vld [vmem:[#allocation5 + $0x48] sm:$0xff]  ;;  %v363_v5 = vld [vmem:[#allocation5 + $0x38] sm:$0xff] }
  0x17   :  { %219 = vmatpush.msra.mxu3 %v550_v9  ;;  %310 = vmatpush.msrb.mxu0 %v517_v0  ;;  %v362_v6 = vld [vmem:[#allocation5 + $0x30] sm:$0xff]  ;;  %v361_v8 = vld [vmem:[#allocation5 + $0x28] sm:$0xff]  ;;  %v359_v10 = vld [vmem:[#allocation5 + $0x18] sm:$0xff] }
  0x18   :  { %172 = vmatpush.msra.mxu1 %v558_v11  ;;  %196 = vmatpush.msra.mxu2 %v558_v11 }
  0x19   :  { %220 = vmatpush.msra.mxu3 %v558_v11  ;;  %311 = vmatpush.msrb.mxu0 %v519_v1 }
  0x1a   :  { %173 = vmatpush.msra.mxu1 %v563_v12  ;;  %197 = vmatpush.msra.mxu2 %v563_v12 }
  0x1b   :  { %221 = vmatpush.msra.mxu3 %v563_v12  ;;  %312 = vmatpush.msrb.mxu0 %v523_v2 }
  0x1c   :  { %174 = vmatpush.msra.mxu1 %v569_v13  ;;  %198 = vmatpush.msra.mxu2 %v569_v13 }
  0x1d   :  { %222 = vmatpush.msra.mxu3 %v569_v13  ;;  %313 = vmatpush.msrb.mxu0 %v531_v4 }
  0x1e   :  { %175 = vmatpush.msra.mxu1 %v575_v14  ;;  %199 = vmatpush.msra.mxu2 %v575_v14 }
  0x1f   :  { %223 = vmatpush.msra.mxu3 %v575_v14  ;;  %314 = vmatpush.msrb.mxu0 %v542_v7 }
  0x20   :  { %176 = vmatpush.msra.mxu1 %v581_v15  ;;  %200 = vmatpush.msra.mxu2 %v581_v15 }
  0x21   :  { %224 = vmatpush.msra.mxu3 %v581_v15  ;;  %315 = vmatpush.msrb.mxu0 %v550_v9 }
  0x22   :  { %177 = vmatpush.msra.mxu1 %v587_v16  ;;  %201 = vmatpush.msra.mxu2 %v587_v16 }
  0x23   :  { %225 = vmatpush.msra.mxu3 %v587_v16  ;;  %316 = vmatpush.msrb.mxu0 %v558_v11 }
  0x24   :  { %178 = vmatpush.msra.mxu1 %v593_v17  ;;  %202 = vmatpush.msra.mxu2 %v593_v17 }
  0x25   :  { %226 = vmatpush.msra.mxu3 %v593_v17  ;;  %317 = vmatpush.msrb.mxu0 %v563_v12 }
  0x26   :  { %179 = vmatpush.msra.mxu1 %v599_v18  ;;  %203 = vmatpush.msra.mxu2 %v599_v18 }
  0x27   :  { %227 = vmatpush.msra.mxu3 %v599_v18  ;;  %318 = vmatpush.msrb.mxu0 %v569_v13 }
  0x28   :  { %180 = vmatpush.msra.mxu1 %v605_v19  ;;  %204 = vmatpush.msra.mxu2 %v605_v19 }
  0x29   :  { %228 = vmatpush.msra.mxu3 %v605_v19  ;;  %319 = vmatpush.msrb.mxu0 %v575_v14 }
  0x2a   :  { %181 = vmatpush.msra.mxu1 %v611_v20  ;;  %205 = vmatpush.msra.mxu2 %v611_v20 }
  0x2b   :  { %182 = vmatmul.f32.vlgmr.msra.gmra.mxu1 %v475_v21  ;;  %229 = vmatpush.msra.mxu3 %v611_v20 }
  0x2c   :  { %238 = vmatpush.msrb.mxu1 %v517_v0  ;;  %262 = vmatpush.msrb.mxu2 %v517_v0 }
  0x2d   :  { %286 = vmatpush.msrb.mxu3 %v517_v0  ;;  %320 = vmatpush.msrb.mxu0 %v581_v15 }
  0x2e   :  { %239 = vmatpush.msrb.mxu1 %v519_v1  ;;  %263 = vmatpush.msrb.mxu2 %v519_v1 }
  0x2f   :  { %287 = vmatpush.msrb.mxu3 %v519_v1  ;;  %321 = vmatpush.msrb.mxu0 %v587_v16 }
  0x30   :  { %240 = vmatpush.msrb.mxu1 %v523_v2  ;;  %264 = vmatpush.msrb.mxu2 %v523_v2 }
  0x31   :  { %288 = vmatpush.msrb.mxu3 %v523_v2  ;;  %322 = vmatpush.msrb.mxu0 %v593_v17 }
  0x32   :  { %241 = vmatpush.msrb.mxu1 %v531_v4  ;;  %265 = vmatpush.msrb.mxu2 %v531_v4 }
  0x33   :  { %289 = vmatpush.msrb.mxu3 %v531_v4  ;;  %323 = vmatpush.msrb.mxu0 %v599_v18 }
  0x34   :  { %242 = vmatpush.msrb.mxu1 %v542_v7  ;;  %266 = vmatpush.msrb.mxu2 %v542_v7 }
  0x35   :  { %290 = vmatpush.msrb.mxu3 %v542_v7  ;;  %324 = vmatpush.msrb.mxu0 %v605_v19 }
  0x36   :  { %243 = vmatpush.msrb.mxu1 %v550_v9  ;;  %267 = vmatpush.msrb.mxu2 %v550_v9 }
  0x37   :  { %291 = vmatpush.msrb.mxu3 %v550_v9  ;;  %325 = vmatpush.msrb.mxu0 %v611_v20 }
  0x38   :  { %244 = vmatpush.msrb.mxu1 %v558_v11  ;;  %268 = vmatpush.msrb.mxu2 %v558_v11 }
  0x39   :  { %292 = vmatpush.msrb.mxu3 %v558_v11  ;;  %405 = vmatmul.msk.f32.gmra.mxu0 %vm71_vm1, %v56_v22  ;;  %v418_v22 = vld [vmem:[%s745_s5] ss:$0 sm:$0xff] }
  0x3a   :  { %245 = vmatpush.msrb.mxu1 %v563_v12  ;;  %269 = vmatpush.msrb.mxu2 %v563_v12 }
  0x3b   :  { %293 = vmatpush.msrb.mxu3 %v563_v12 }
  0x3c   :  { %246 = vmatpush.msrb.mxu1 %v569_v13  ;;  %270 = vmatpush.msrb.mxu2 %v569_v13 }
  0x3d   :  { %294 = vmatpush.msrb.mxu3 %v569_v13 }
  0x3e   :  { %247 = vmatpush.msrb.mxu1 %v575_v14  ;;  %271 = vmatpush.msrb.mxu2 %v575_v14 }
  0x3f   :  { %295 = vmatpush.msrb.mxu3 %v575_v14 }
  0x40   :  { %248 = vmatpush.msrb.mxu1 %v581_v15  ;;  %272 = vmatpush.msrb.mxu2 %v581_v15 }
  0x41   :  { %296 = vmatpush.msrb.mxu3 %v581_v15  ;;  %406 = vmatmul.msk.f32.gmra.mxu0 %vm71_vm1, %v57_v29 }
  0x42   :  { %249 = vmatpush.msrb.mxu1 %v587_v16  ;;  %273 = vmatpush.msrb.mxu2 %v587_v16 }
  0x43   :  { %297 = vmatpush.msrb.mxu3 %v587_v16 }
  0x44   :  { %250 = vmatpush.msrb.mxu1 %v593_v17  ;;  %274 = vmatpush.msrb.mxu2 %v593_v17 }
  0x45   :  { %298 = vmatpush.msrb.mxu3 %v593_v17 }
  0x46   :  { %251 = vmatpush.msrb.mxu1 %v599_v18  ;;  %275 = vmatpush.msrb.mxu2 %v599_v18 }
  0x47   :  { %299 = vmatpush.msrb.mxu3 %v599_v18 }
  0x48   :  { %252 = vmatpush.msrb.mxu1 %v605_v19  ;;  %276 = vmatpush.msrb.mxu2 %v605_v19 }
  0x49   :  { %300 = vmatpush.msrb.mxu3 %v605_v19  ;;  %407 = vmatmul.msk.f32.gmra.mxu0 %vm71_vm1, %v58_v35 }
  0x4a   :  { %253 = vmatpush.msrb.mxu1 %v611_v20  ;;  %277 = vmatpush.msrb.mxu2 %v611_v20 }
  0x4b   :  { %301 = vmatpush.msrb.mxu3 %v611_v20 }
  0x4c   :  { %334 = vmatpush.msra.mxu1 %v517_v0  ;;  %v367_v0 = vld [vmem:[#allocation5 + $0x58] sm:$0xff] }
  0x4e   :  { %335 = vmatpush.msra.mxu1 %v519_v1 }
  0x50   :  { %336 = vmatpush.msra.mxu1 %v523_v2  ;;  %v366_v2 = vld [vmem:[#allocation5 + $0x50] sm:$0xff] }
  0x51   :  { %408 = vmatmul.msk.f32.gmra.mxu0 %vm71_vm1, %v59_v41 }
  0x52   :  { %337 = vmatpush.msra.mxu1 %v531_v4  ;;  %v364_v4 = vld [vmem:[#allocation5 + $0x40] sm:$0xff] }
  0x54   :  { %338 = vmatpush.msra.mxu1 %v542_v7 }
  0x56   :  { %339 = vmatpush.msra.mxu1 %v550_v9  ;;  %v360_v9 = vld [vmem:[#allocation5 + $0x20] sm:$0xff] }
  0x58   :  { %340 = vmatpush.msra.mxu1 %v558_v11 }
  0x59   :  { %409 = vmatmul.msk.f32.gmra.mxu0 %vm71_vm1, %v60_v47 }
  0x5a   :  { %341 = vmatpush.msra.mxu1 %v563_v12 }
  0x5c   :  { %342 = vmatpush.msra.mxu1 %v569_v13 }
  0x5e   :  { %343 = vmatpush.msra.mxu1 %v575_v14 }
  0x60   :  { %344 = vmatpush.msra.mxu1 %v581_v15  ;;  %v358_v15 = vld [vmem:[#allocation5 + $0x10] sm:$0xff] }
  0x61   :  { %410 = vmatmul.msk.f32.gmra.mxu0 %vm71_vm1, %v61_v48 }
  0x62   :  { %345 = vmatpush.msra.mxu1 %v587_v16  ;;  %v357_v16 = vld [vmem:[#allocation5 + $0x8] sm:$0xff] }
  0x64   :  { %346 = vmatpush.msra.mxu1 %v593_v17  ;;  %v356_v17 = vld [vmem:[#allocation5] sm:$0xff] }
  0x66   :  { %347 = vmatpush.msra.mxu1 %v599_v18 }
  0x68   :  { %348 = vmatpush.msra.mxu1 %v605_v19 }
  0x69   :  { %411 = vmatmul.msk.f32.gmra.mxu0 %vm71_vm1, %v62_v49 }
  0x6a   :  { %349 = vmatpush.msra.mxu1 %v611_v20 }
  0x92   :  { %v117_v24 = vpop.f32.mrf.mxu0 }
  0x93   :  { %v118_v25 = vadd.f32 %v700_v23, %v117_v24 }
  0xa8   :  { %v183_v26 = vpop.f32.mrf.mxu1 }
  0xa9   :  { %v186_v27 = vadd.f32 %v183_v26, %v118_v25 }
  0xab   :  { %v187_v28 = vmax.f32 %v186_v27, 0.0 }
  0xad   :  { %206 = vmatmul.f32.vlgmr.msra.gmra.mxu2 %v187_v28 }
  0xae   :  { %376 = vmatpush.msra.mxu2 %v371_v60 }
  0xb0   :  { %377 = vmatpush.msra.mxu2 %v370_v61 }
  0xb2   :  { %378 = vmatpush.msra.mxu2 %v369_v62 }
  0xb4   :  { %379 = vmatpush.msra.mxu2 %v368_v63 }
  0xb6   :  { %v120_v30 = vpop.f32.mrf.mxu0  ;;  %380 = vmatpush.msra.mxu2 %v367_v0 }
  0xb7   :  { %v121_v31 = vadd.f32 %v700_v23, %v120_v30 }
  0xb8   :  { %381 = vmatpush.msra.mxu2 %v366_v2 }
  0xba   :  { %382 = vmatpush.msra.mxu2 %v365_v3 }
  0xbc   :  { %383 = vmatpush.msra.mxu2 %v364_v4 }
  0xbe   :  { %v123_v36 = vpop.f32.mrf.mxu0  ;;  %384 = vmatpush.msra.mxu2 %v363_v5 }
  0xbf   :  { %v124_v37 = vadd.f32 %v700_v23, %v123_v36 }
  0xc0   :  { %385 = vmatpush.msra.mxu2 %v362_v6 }
  0xc2   :  { %386 = vmatpush.msra.mxu2 %v361_v8 }
  0xc4   :  { %387 = vmatpush.msra.mxu2 %v360_v9 }
  0xc6   :  { %v126_v42 = vpop.f32.mrf.mxu0  ;;  %388 = vmatpush.msra.mxu2 %v359_v10 }
  0xc7   :  { %v127_v43 = vadd.f32 %v700_v23, %v126_v42 }
  0xc8   :  { %389 = vmatpush.msra.mxu2 %v358_v15 }
  0xca   :  { %390 = vmatpush.msra.mxu2 %v357_v16 }
  0xcc   :  { %391 = vmatpush.msra.mxu2 %v356_v17 }
  0xce   :  { %v129_v50 = vpop.f32.mrf.mxu0 }
  0xcf   :  { %v130_v51 = vadd.f32 %v700_v23, %v129_v50 }
  0xd6   :  { %v132_v55 = vpop.f32.mrf.mxu0 }
  0xd7   :  { %v133_v56 = vadd.f32 %v700_v23, %v132_v55 }
  0xde   :  { %v135_v1 = vpop.f32.mrf.mxu0 }
  0xdf   :  { %v136_v11 = vadd.f32 %v700_v23, %v135_v1 }
  0xe6   :  { %v138_v7 = vpop.f32.mrf.mxu0 }
  0xe7   :  { %v139_v18 = vadd.f32 %v700_v23, %v138_v7 }
 0x130   :  { %v207_v32 = vpop.f32.mrf.mxu2 }
 0x131   :  { %v210_v33 = vadd.f32 %v207_v32, %v121_v31 }
 0x133   :  { %v211_v34 = vmax.f32 %v210_v33, 0.0 }
 0x135   :  { %230 = vmatmul.f32.vlgmr.msra.gmra.mxu3 %v211_v34 }
 0x1b8   :  { %v231_v38 = vpop.f32.mrf.mxu3 }
 0x1b9   :  { %v234_v39 = vadd.f32 %v231_v38, %v124_v37 }
 0x1bb   :  { %v235_v40 = vmax.f32 %v234_v39, 0.0 }
 0x1bd   :  { %254 = vmatmul.f32.vlgmr.msrb.gmra.mxu1 %v235_v40 }
 0x23a   :  { %v255_v44 = vpop.f32.mrf.mxu1 }
 0x23b   :  { %v258_v45 = vadd.f32 %v255_v44, %v127_v43 }
 0x23d   :  { %v259_v46 = vmax.f32 %v258_v45, 0.0 }
 0x23f   :  { %278 = vmatmul.f32.vlgmr.msrb.gmra.mxu2 %v259_v46 }
 0x2c2   :  { %v279_v52 = vpop.f32.mrf.mxu2 }
 0x2c3   :  { %v282_v53 = vadd.f32 %v279_v52, %v130_v51 }
 0x2c5   :  { %v283_v54 = vmax.f32 %v282_v53, 0.0 }
 0x2c7   :  { %302 = vmatmul.f32.vlgmr.msrb.gmra.mxu3 %v283_v54 }
 0x34a   :  { %v303_v57 = vpop.f32.mrf.mxu3 }
 0x34b   :  { %v306_v58 = vadd.f32 %v303_v57, %v133_v56 }
 0x34d   :  { %v307_v59 = vmax.f32 %v306_v58, 0.0 }
 0x34f   :  { %326 = vmatmul.f32.vlgmr.msrb.gmra.mxu0 %v307_v59 }
 0x3cc   :  { %v327_v12 = vpop.f32.mrf.mxu0 }
 0x3cd   :  { %v330_v13 = vadd.f32 %v327_v12, %v136_v11 }
 0x3cf   :  { %v331_v14 = vmax.f32 %v330_v13, 0.0 }
 0x3d1   :  { %350 = vmatmul.f32.vlgmr.msra.gmra.mxu1 %v331_v14 }
 0x44e   :  { %v351_v19 = vpop.f32.mrf.mxu1 }
 0x44f   :  { %v354_v20 = vadd.f32 %v351_v19, %v139_v18 }
 0x451   :  { %v355_v21 = vmax.f32 %v354_v20, 0.0 }
 0x453   :  { %392 = vmatmul.f32.vlgmr.msra.gmra.mxu2 %v355_v21 }
 0x4d6   :  { %v393_v24 = vpop.f32.mrf.mxu2 }
 0x4d7   :  { %v394_v25 = vadd.f32 %v418_v22, %v393_v24 }
 0x4d9   :  { %396 = vst [vmem:[%s746_s6] sm:$0xff] %v394_v25 }
 0x4da   :  { %401 = vsyncpa [#allocation4], 1 }
 0x4db   :  { %402 = vsyncpa [#allocation6], 1 }

</bundles_post_ra>
